<compile_context>
chip_gen: v7x
topology: tpu7x:2x2x1
jax: 0.10.0
libtpu: 0.0.40
codegen_flags: <defaults>
</compile_context>

<pallas_src>
import functools

import jax
import jax.numpy as jnp
from jax.experimental import pallas as pl
from jax.experimental.pallas import tpu as pltpu


def pareto_kernel(state_ref, point_ref, act_ref,
                  w1_ref, w3_ref, bias_ref,
                  out_ref):
    state = state_ref[...]                     # (nS0, TB) f32
    point = point_ref[...]                     # (nP,  TB) f32
    act = act_ref[...]                         # (1,   TB) int32

    nS0 = state.shape[0]
    tb = state.shape[1]
    h1 = w1_ref.shape[0]                       # fc1 width (20)
    h3 = w3_ref.shape[0]                       # fc3 width (10)
    nA = w3_ref.shape[1] - h1

    w1 = w1_ref[...]                           # (h1, nS0 + nP)
    w3 = w3_ref[...]                           # (h3, h1 + nA)
    b1 = bias_ref[0:h1, :]                     # (h1, 1)
    b3 = bias_ref[h1:h1 + h3, :]               # (h3, 1)
    wo = bias_ref[h1 + h3:h1 + 2 * h3, :]      # (h3, 1)
    bo = bias_ref[h1 + 2 * h3:h1 + 2 * h3 + 1, :]  # (1, 1)

    # One-hot over sublanes: (nA, TB).
    oh = (jax.lax.broadcasted_iota(jnp.int32, (nA, tb), 0) == act).astype(jnp.float32)

    # fc1 = relu(W1a^T @ state + W1b^T @ point + b1)   -> (h1, TB)
    fc1 = (jnp.dot(w1[:, :nS0], state, preferred_element_type=jnp.float32)
           + jnp.dot(w1[:, nS0:], point, preferred_element_type=jnp.float32)
           + b1)
    fc1 = jnp.maximum(fc1, 0.0)

    # fc3 = relu(W3a^T @ fc1 + T^T @ oh + b3)          -> (h3, TB)
    #   T = relu(W2 + b2) @ W3b precomputed in the wrapper, so
    #   T^T @ oh == (relu(oh @ W2 + b2) @ W3b)^T exactly.
    fc3 = (jnp.dot(w3[:, :h1], fc1, preferred_element_type=jnp.float32)
           + jnp.dot(w3[:, h1:], oh, preferred_element_type=jnp.float32)
           + b3)
    fc3 = jnp.maximum(fc3, 0.0)

    # out = Wo @ fc3 + bo, done as a sublane reduce over h3 rows.
    out_ref[...] = jnp.sum(fc3 * wo, axis=0, keepdims=True) + bo   # (1, TB)


def _round_up(x, m):
    return -(-x // m) * m


@functools.partial(jax.jit, static_argnames=("tile_b",))
def pareto_forward(state, point, action, kparams, tile_b=8192):
    """state: (B, nS0) f32, point: (B, nO-1) f32, action: (B,) int.

    kparams = (w1_k, w3_k, bias) from prepare_params().
    """
    state = state.astype(jnp.float32)
    point = point.astype(jnp.float32)
    act = action.astype(jnp.int32)
    B, nS0 = state.shape
    nP = point.shape[1]

    w1_k, w3_k, bias = kparams

    # Transposed layout: batch on the lane (minor) dim.
    state_t = state.T                 # (nS0, B)
    point_t = point.T                 # (nP,  B)
    act_t = act.reshape(1, B)         # (1,   B)

    # Batch tile: multiple of 128 lanes, at most tile_b; if the padded batch
    # has room, cap so the grid has >= 2 steps (v7x megacore utilization).
    B128 = _round_up(max(B, 1), 128)
    tb = min(tile_b, B128)
    if B128 >= 2 * 128:
        tb = min(tb, _round_up((B128 + 1) // 2, 128))
    tb = max(_round_up(tb, 128), 128)
    Bp = _round_up(B128, tb)

    if Bp != B:
        pad = Bp - B
        state_t = jnp.pad(state_t, ((0, 0), (0, pad)))
        point_t = jnp.pad(point_t, ((0, 0), (0, pad)))
        act_t = jnp.pad(act_t, ((0, 0), (0, pad)))   # padded actions = 0 (valid)

    grid = (Bp // tb,)

    batch_spec = lambda f: pl.BlockSpec((f, tb), lambda i: (0, i))
    whole = lambda shp: pl.BlockSpec(shp, lambda i: (0, 0))

    out = pl.pallas_call(
        pareto_kernel,
        out_shape=jax.ShapeDtypeStruct((1, Bp), jnp.float32),
        grid=grid,
        in_specs=[
            batch_spec(nS0),            # state   (nS0, Bp)
            batch_spec(nP),             # point   (nP,  Bp)
            batch_spec(1),              # action  (1,   Bp)
            whole(w1_k.shape),          # W1^T slab        (20, nS0+nP)
            whole(w3_k.shape),          # [W3a^T | T^T]    (10, 20+nA)
            whole(bias.shape),          # [b1; b3; wo; bo] (41, 1)
        ],
        out_specs=batch_spec(1),        # (1, Bp) lane-dense output
        compiler_params=pltpu.CompilerParams(
            dimension_semantics=("parallel",)),   # megacore split on v7x
    )(state_t, point_t, act_t, w1_k, w3_k, bias)

    return out[:, :B].T                # (B, 1)


def init_raw_params(key, nS0, nA, nO):
    """PyTorch-Linear-style params, stored as (in_features, out_features)."""
    fc1_in = nS0 + nO - 1

    def linear(key, fan_in, fan_out):
        kw, kb = jax.random.split(key)
        bound = 1.0 / jnp.sqrt(fan_in)
        w = jax.random.uniform(kw, (fan_in, fan_out), jnp.float32, -bound, bound)
        b = jax.random.uniform(kb, (1, fan_out), jnp.float32, -bound, bound)
        return w, b

    k1, k2, k3, k4 = jax.random.split(key, 4)
    w1, b1 = linear(k1, fc1_in, 20)
    w2, b2 = linear(k2, nA, nA)
    w3, b3 = linear(k3, 20 + nA, 10)
    wo, bo = linear(k4, 10, 1)
    return (w1, b1, w2, b2, w3, b3, wo, bo)


def prepare_params(raw, nS0):
    """Fold / consolidate raw (in_features, out_features) params into the
    kernel's (out, in) slabs.

    NOTE: if loading real PyTorch Linear weights (stored (out, in)), transpose
    them to (in, out) before calling this.
    """
    w1, b1, w2, b2, w3, b3, wo, bo = raw
    h1 = w1.shape[1]                               # 20
    w3a = w3[:h1, :]                               # (20, 10)  fc1 part of fc3
    w3b = w3[h1:, :]                               # (nA, 10)  fc2 part of fc3
    # fc2 depends only on the action: relu(W2[a] + b2) @ W3b == T[a]
    t = jnp.maximum(w2 + b2, 0.0) @ w3b            # (nA, 10)

    w1_k = w1.T                                    # (20, nS0+nP)
    w3_k = jnp.concatenate([w3a.T, t.T], axis=1)   # (10, 20+nA)
    bias = jnp.concatenate([b1.reshape(-1, 1),     # (20, 1)
                            b3.reshape(-1, 1),     # (10, 1)
                            wo.reshape(-1, 1),     # (10, 1)
                            bo.reshape(-1, 1)],    # (1, 1)
                           axis=0)                 # (41, 1)
    return (w1_k, w3_k, bias)


def pareto_forward_ref(state, point, action, raw):
    """Pure-JAX reference with the ORIGINAL (unfolded) math."""
    w1, b1, w2, b2, w3, b3, wo, bo = raw
    inp = jnp.concatenate([state, point], axis=1).astype(jnp.float32)
    nA = w2.shape[0]
    oh = jax.nn.one_hot(action, nA, dtype=jnp.float32)
    fc1 = jax.nn.relu(inp @ w1 + b1)
    fc2 = jax.nn.relu(oh @ w2 + b2)
    fc3 = jax.nn.relu(jnp.concatenate([fc1, fc2], axis=1) @ w3 + b3)
    return fc3 @ wo + bo


if __name__ == "__main__":
    # Small shapes consistent with the module.
    nS0, nA, nO = 16, 8, 3
    key = jax.random.PRNGKey(0)
    k_params, k_data = jax.random.split(key)
    raw = init_raw_params(k_params, nS0, nA, nO)
    kparams = prepare_params(raw, nS0)

    for B in (12, 300):   # 12: single tile; 300: multi-step parallel grid
        ks, kp, ka, k_data = jax.random.split(k_data, 4)
        state = jax.random.normal(ks, (B, nS0), jnp.float32)
        point = jax.random.normal(kp, (B, nO - 1), jnp.float32)
        action = jax.random.randint(ka, (B,), 0, nA, jnp.int32)

        out = pareto_forward(state, point, action, kparams)
        jax.block_until_ready(out)

        ref = pareto_forward_ref(state, point, action, raw)
        assert out.shape == (B, 1)
        assert jnp.allclose(out, ref, atol=2e-5, rtol=1e-5), (
            float(jnp.max(jnp.abs(out - ref))))

    print("KERNEL_OK")
</pallas_src>

<mosaic_0001>
module attributes {stable_mosaic.version = 11 : i64} {
  func.func @pareto_kernel(%arg0: i32, %arg1: memref<16x128xf32, #tpu.memory_space<vmem>>, %arg2: memref<2x128xf32, #tpu.memory_space<vmem>>, %arg3: memref<1x128xi32, #tpu.memory_space<vmem>>, %arg4: memref<20x18xf32, #tpu.memory_space<vmem>>, %arg5: memref<10x28xf32, #tpu.memory_space<vmem>>, %arg6: memref<41x1xf32, #tpu.memory_space<vmem>>, %arg7: memref<1x128xf32, #tpu.memory_space<vmem>>) attributes {dimension_semantics = [#tpu.dimension_semantics<parallel>], iteration_bounds = array<i64: 1>, scalar_prefetch = 0 : i64, scratch_operands = 0 : i64, tpu.core_type = #tpu.core_type<tc>, window_params = [{transform_indices = @transform_0, window_bounds = array<i64: 16, 128>}, {transform_indices = @transform_1, window_bounds = array<i64: 2, 128>}, {transform_indices = @transform_2, window_bounds = array<i64: 1, 128>}, {pipeline_mode = #tpu.pipeline_mode<synchronous>, transform_indices = @transform_3, window_bounds = array<i64: 20, 18>}, {pipeline_mode = #tpu.pipeline_mode<synchronous>, transform_indices = @transform_4, window_bounds = array<i64: 10, 28>}, {pipeline_mode = #tpu.pipeline_mode<synchronous>, transform_indices = @transform_5, window_bounds = array<i64: 41, 1>}, {transform_indices = @transform_6, window_bounds = array<i64: 1, 128>}]} {
    %c0 = arith.constant 0 : index
    %c0_0 = arith.constant 0 : index
    %0 = vector.load %arg1[%c0, %c0_0] : memref<16x128xf32, #tpu.memory_space<vmem>>, vector<16x128xf32>
    %c0_1 = arith.constant 0 : index
    %c0_2 = arith.constant 0 : index
    %1 = vector.load %arg2[%c0_1, %c0_2] : memref<2x128xf32, #tpu.memory_space<vmem>>, vector<2x128xf32>
    %c0_3 = arith.constant 0 : index
    %c0_4 = arith.constant 0 : index
    %2 = vector.load %arg3[%c0_3, %c0_4] : memref<1x128xi32, #tpu.memory_space<vmem>>, vector<1x128xi32>
    %c0_5 = arith.constant 0 : index
    %c0_6 = arith.constant 0 : index
    %3 = vector.load %arg4[%c0_5, %c0_6] : memref<20x18xf32, #tpu.memory_space<vmem>>, vector<20x18xf32>
    %c0_7 = arith.constant 0 : index
    %c0_8 = arith.constant 0 : index
    %4 = vector.load %arg5[%c0_7, %c0_8] : memref<10x28xf32, #tpu.memory_space<vmem>>, vector<10x28xf32>
    %c0_9 = arith.constant 0 : index
    %c0_10 = arith.constant 0 : index
    %5 = vector.load %arg6[%c0_9, %c0_10] : memref<41x1xf32, #tpu.memory_space<vmem>>, vector<20x1xf32>
    %c20 = arith.constant 20 : index
    %c0_11 = arith.constant 0 : index
    %6 = vector.load %arg6[%c20, %c0_11] : memref<41x1xf32, #tpu.memory_space<vmem>>, vector<10x1xf32>
    %c30 = arith.constant 30 : index
    %c0_12 = arith.constant 0 : index
    %7 = vector.load %arg6[%c30, %c0_12] : memref<41x1xf32, #tpu.memory_space<vmem>>, vector<10x1xf32>
    %c40 = arith.constant 40 : index
    %c0_13 = arith.constant 0 : index
    %8 = vector.load %arg6[%c40, %c0_13] : memref<41x1xf32, #tpu.memory_space<vmem>>, vector<1x1xf32>
    %9 = tpu.iota {dimensions = array<i32: 0>} : vector<8x128xi32>
    %10 = vector.broadcast %2 : vector<1x128xi32> to vector<8x128xi32>
    %11 = arith.cmpi eq, %9, %10 : vector<8x128xi32>
    %12 = arith.extui %11 : vector<8x128xi1> to vector<8x128xi32>
    %13 = arith.sitofp %12 : vector<8x128xi32> to vector<8x128xf32>
    %14 = vector.extract_strided_slice %3 {offsets = [0, 0], sizes = [20, 16], strides = [1, 1]} : vector<20x18xf32> to vector<20x16xf32>
    %cst = arith.constant dense<0.000000e+00> : vector<20x128xf32>
    %15 = tpu.matmul %14, %0, %cst {dimension_numbers = #tpu.dot_dimension_numbers<[1], [0], [0], [1], [0, 0, 1, 1], [], []>} : vector<20x16xf32>, vector<16x128xf32>, vector<20x128xf32> -> vector<20x128xf32>
    %16 = vector.extract_strided_slice %3 {offsets = [0, 16], sizes = [20, 2], strides = [1, 1]} : vector<20x18xf32> to vector<20x2xf32>
    %cst_14 = arith.constant dense<0.000000e+00> : vector<20x128xf32>
    %17 = tpu.matmul %16, %1, %cst_14 {dimension_numbers = #tpu.dot_dimension_numbers<[1], [0], [0], [1], [0, 0, 1, 1], [], []>} : vector<20x2xf32>, vector<2x128xf32>, vector<20x128xf32> -> vector<20x128xf32>
    %18 = arith.addf %15, %17 : vector<20x128xf32>
    %19 = vector.broadcast %5 : vector<20x1xf32> to vector<20x128xf32>
    %20 = arith.addf %18, %19 : vector<20x128xf32>
    %cst_15 = arith.constant 0.000000e+00 : f32
    %21 = vector.broadcast %cst_15 : f32 to vector<20x128xf32>
    %22 = arith.maximumf %20, %21 : vector<20x128xf32>
    %23 = vector.extract_strided_slice %4 {offsets = [0, 0], sizes = [10, 20], strides = [1, 1]} : vector<10x28xf32> to vector<10x20xf32>
    %cst_16 = arith.constant dense<0.000000e+00> : vector<10x128xf32>
    %24 = tpu.matmul %23, %22, %cst_16 {dimension_numbers = #tpu.dot_dimension_numbers<[1], [0], [0], [1], [0, 0, 1, 1], [], []>} : vector<10x20xf32>, vector<20x128xf32>, vector<10x128xf32> -> vector<10x128xf32>
    %25 = vector.extract_strided_slice %4 {offsets = [0, 20], sizes = [10, 8], strides = [1, 1]} : vector<10x28xf32> to vector<10x8xf32>
    %cst_17 = arith.constant dense<0.000000e+00> : vector<10x128xf32>
    %26 = tpu.matmul %25, %13, %cst_17 {dimension_numbers = #tpu.dot_dimension_numbers<[1], [0], [0], [1], [0, 0, 1, 1], [], []>} : vector<10x8xf32>, vector<8x128xf32>, vector<10x128xf32> -> vector<10x128xf32>
    %27 = arith.addf %24, %26 : vector<10x128xf32>
    %28 = vector.broadcast %6 : vector<10x1xf32> to vector<10x128xf32>
    %29 = arith.addf %27, %28 : vector<10x128xf32>
    %cst_18 = arith.constant 0.000000e+00 : f32
    %30 = vector.broadcast %cst_18 : f32 to vector<10x128xf32>
    %31 = arith.maximumf %29, %30 : vector<10x128xf32>
    %32 = vector.broadcast %7 : vector<10x1xf32> to vector<10x128xf32>
    %33 = arith.mulf %31, %32 : vector<10x128xf32>
    %cst_19 = arith.constant dense<0.000000e+00> : vector<128xf32>
    %34 = vector.multi_reduction <add>, %33, %cst_19 [0] : vector<10x128xf32> to vector<128xf32>
    %35 = vector.shape_cast %34 : vector<128xf32> to vector<1x128xf32>
    %36 = vector.broadcast %8 : vector<1x1xf32> to vector<1x128xf32>
    %37 = arith.addf %35, %36 : vector<1x128xf32>
    %c0_20 = arith.constant 0 : index
    %c0_21 = arith.constant 0 : index
    %38 = vector.load %arg7[%c0_20, %c0_21] : memref<1x128xf32, #tpu.memory_space<vmem>>, vector<1x128xf32>
    tpu.vector_store %arg7[%c0_20, %c0_21], %37 {strides = array<i32>} : memref<1x128xf32, #tpu.memory_space<vmem>>, vector<1x128xf32>,
    return
  }
  func.func @transform_0(%arg0: i32) -> (i32, i32) {
    %c0_i32 = arith.constant 0 : i32
    %c0_i32_0 = arith.constant 0 : i32
    return %c0_i32, %arg0 : i32, i32
  }
  func.func @transform_1(%arg0: i32) -> (i32, i32) {
    %c0_i32 = arith.constant 0 : i32
    %c0_i32_0 = arith.constant 0 : i32
    return %c0_i32, %arg0 : i32, i32
  }
  func.func @transform_2(%arg0: i32) -> (i32, i32) {
    %c0_i32 = arith.constant 0 : i32
    %c0_i32_0 = arith.constant 0 : i32
    return %c0_i32, %arg0 : i32, i32
  }
  func.func @transform_3(%arg0: i32) -> (i32, i32) {
    %c0_i32 = arith.constant 0 : i32
    %c0_i32_0 = arith.constant 0 : i32
    %c0_i32_1 = arith.constant 0 : i32
    return %c0_i32, %c0_i32_0 : i32, i32
  }
  func.func @transform_4(%arg0: i32) -> (i32, i32) {
    %c0_i32 = arith.constant 0 : i32
    %c0_i32_0 = arith.constant 0 : i32
    %c0_i32_1 = arith.constant 0 : i32
    return %c0_i32, %c0_i32_0 : i32, i32
  }
  func.func @transform_5(%arg0: i32) -> (i32, i32) {
    %c0_i32 = arith.constant 0 : i32
    %c0_i32_0 = arith.constant 0 : i32
    %c0_i32_1 = arith.constant 0 : i32
    return %c0_i32, %c0_i32_0 : i32, i32
  }
  func.func @transform_6(%arg0: i32) -> (i32, i32) {
    %c0_i32 = arith.constant 0 : i32
    %c0_i32_0 = arith.constant 0 : i32
    return %c0_i32, %arg0 : i32, i32
  }
}

</mosaic_0001>

<bundles_post_ra>
// kernel: pareto_forward.1
= control target key start
LH: loop header
LB: loop body
LE: loop exit
PB: predicated region body
PF: predicated region fallthrough
CT: control target
= control target key end

     0   :  { %vm65_vm0 = vcmask 1041408   ;;  %v562_v2 = vmov 0.0   ;;  %vm563_vm1 = vmmov 0   ;;  %s564_s25 = smov 112   ;;  %v565_v6 = vmov 0.0|0.0   ;;  %s567_s14 = smov 108   ;;  %s677_s3 = inlined_call_operand.vmem [shape: f32[20,18], index: 3, kind: input, shape index: {}]   ;;  %s678_s1 = inlined_call_operand.vmem [shape: f32[2,128], index: 1, kind: input, shape index: {}]   ;;  %s679_s5 = inlined_call_operand.vmem [shape: f32[41,1], index: 5, kind: input, shape index: {}]   ;;  %s680_s4 = inlined_call_operand.vmem [shape: f32[10,28], index: 4, kind: input, shape index: {}]   ;;  %s681_s0 = inlined_call_operand.vmem [shape: f32[16,128], index: 0, kind: input, shape index: {}]   ;;  %s682_s2 = inlined_call_operand.vmem [shape: s32[1,128], index: 2, kind: input, shape index: {}]   ;;  %s683_s6 = inlined_call_operand.vmem [shape: f32[1,128], index: 6, kind: output, shape index: {}]  }
   0x1   :  { %v607_v0 = vld [vmem:[%s677_s3 + $0x10] sm:$0xf]  ;;  %v28_v1 = vld [vmem:[%s677_s3 + $0x8] sm:$0xff]  ;;  %549 = vmatprep.subr.mxu1 %v562_v2  ;;  %512 = vmatprep.mubr.msk.f32.mxu1 %vm563_vm1, %v562_v2  ;;  %v25_v3 = vld [vmem:[%s678_s1] sm:$0x3]  ;;  %v566_v7 = vmov 0   ;;  %v40_v26 = vlaneseq }
   0x2   :  { %56 = vrot.lane.b32.xlu0 %v607_v0, %s564_s25  ;;  %54 = vrot.lane.b32.xlu1 %v28_v1, %s564_s25  ;;  %v27_v4 = vld [vmem:[%s677_s3] sm:$0xff]  ;;  %v34_v8 = vld [vmem:[%s679_s5 + $0x10] sm:$0xf]  ;;  %vm58_vm2 = vcmask 15360   ;;  %vm149_vm3 = vcmask 130048   ;;  %v568_v30 = vmov 1.0  }
   0x3   :  { %550 = vmatpush3.msk.msra.mxu1 %vm65_vm0, %v25_v3  ;;  %504 = vmatprep.subr.mxu0 %v562_v2  ;;  %v32_v5 = vld [vmem:[%s679_s5] sm:$0xff]  ;;  %v33_v9 = vld [vmem:[%s679_s5 + $0x8] sm:$0xff]  ;;  %v36_v12 = vld [vmem:[%s679_s5 + $0x1c] sm:$0x3]  ;;  %v41_v27 = vshrl.u32 %v40_v26, 7  ;;  %vm263_vm5 = vcmask 64512  }
   0x4   :  { %542 = vmatprep.subr.bf16.mxu1 %v565_v6  ;;  %506 = vmatprep.mubr.msk.f32.mxu0 %vm563_vm1, %v562_v2  ;;  %v30_v10 = vld [vmem:[%s680_s4] sm:$0xff]  ;;  %v638_v11 = vld [vmem:[%s680_s4 + $0x8] sm:$0x3]  ;;  %v35_v13 = vld [vmem:[%s679_s5 + $0x14] sm:$0xff]  ;;  %vm343_vm6 = vcmask 162816   ;;  %vm348_vm7 = vcmask 1043456  }
   0x5   :  { %505 = vmatpush3.msk.msra.mxu0 %vm65_vm0, %v25_v3  ;;  %560 = vset.pattern.permute.xlu1 %v566_v7  ;;  %v38_v14 = vld [vmem:[%s679_s5 + $0x26] sm:$0x3]  ;;  %v37_v15 = vld [vmem:[%s679_s5 + $0x1e] sm:$0xff]  ;;  %v39_v16 = vld [vmem:[%s679_s5 + $0x28] sm:$0x1] }
   0x6   :  { %52 = vrot.lane.b32.xlu0 %v27_v4, %s564_s25  ;;  %238 = vperm.xlu1 %560, %v32_v5   ;;  %v23_v17 = vld [vmem:[%s681_s0] sm:$0xff]  ;;  %v24_v18 = vld [vmem:[%s681_s0 + $0x8] sm:$0xff] }
   0x7   :  { %561 = vset.pattern.permute.xlu0 %v566_v7  ;;  %v543_v19 = vpack.c.bf16 %v24_v18, %v23_v17  ;;  %v472_v28 = vld [vmem:[%s682_s2] ss:$0 sm:$0xff] }
   0x8   :  { %vm46_vm4 = vcmp.eq.s32.totalorder %v41_v27, %v472_v28 }
   0x9   :  { %528 = vmatprep.subr.msk.mxu0 %vm46_vm4, %v568_v30 }
   0xa   :  { %248 = vperm.xlu1 %560, %v34_v8   ;;  %243 = vperm.xlu0 %561, %v33_v9  }
   0xe   :  { %259 = vrot.lane.b32.xlu1 %v30_v10, %s567_s14  ;;  %261 = vrot.lane.b32.xlu0 %v638_v11, %s567_s14 }
  0x12   :  { %434 = vperm.xlu1 %560, %v36_v12   ;;  %429 = vperm.xlu0 %561, %v35_v13  }
  0x16   :  { %448 = vperm.xlu1 %560, %v38_v14   ;;  %443 = vperm.xlu0 %561, %v37_v15  }
  0x1a   :  { %463 = vperm.xlu1 %560, %v39_v16  }
  0x74   :  { %v57_v20 = vpop.permute.xlu0 %56  ;;  %v55_v22 = vpop.permute.xlu1 %54 }
  0x75   :  { %513 = vmatmul.mubr.msk.f32.vlgmr.msra.gmra.mrb[0].mxu1 %vm58_vm2, %v57_v20 }
  0x76   :  { %544 = vmatpush3.bf16.msra.mxu1 %v543_v19  ;;  %519 = vmatprep.mubr.msk.f32.mxu1 %vm563_vm1, %v562_v2 }
  0x78   :  { %v53_v21 = vpop.permute.xlu0 %52 }
  0x79   :  { %507 = vmatmul.mubr.msk.f32.vlgmr.msra.gmra.mrb[0].mxu0 %vm58_vm2, %v53_v21  ;;  %520 = vmatmul.mubr.msk.f32.vlgmr.msra.gmra.mrb[2].mxu1 %vm149_vm3, %v27_v4 }
  0x7a   :  { %509 = vmatprep.mubr.msk.f32.mxu0 %vm563_vm1, %v562_v2  ;;  %522 = vmatprep.mubr.msk.f32.mxu1 %vm563_vm1, %v562_v2 }
  0x7b   :  { %529 = vmatpush3.msk.msra.mxu0 %vm46_vm4, %v568_v30 }
  0x7d   :  { %510 = vmatmul.mubr.msk.f32.gmra.mrb[2].mxu0 %vm58_vm2, %v55_v22  ;;  %523 = vmatmul.mubr.msk.f32.gmra.mrb[4].mxu1 %vm149_vm3, %v28_v1 }
  0x7e   :  { %525 = vmatprep.mubr.msk.f32.mxu1 %vm563_vm1, %v562_v2 }
  0x81   :  { %526 = vmatmul.mubr.msk.f32.gmra.mrb[6].mxu1 %vm149_vm3, %v607_v0 }
  0x85   :  { %v239_v23 = vpop.permute.xlu1 %238 }
  0x89   :  { %v249_v24 = vpop.permute.xlu1 %248  ;;  %v244_v25 = vpop.permute.xlu0 %243 }
  0x8d   :  { %v260_v29 = vpop.permute.xlu1 %259  ;;  %v262_v31 = vpop.permute.xlu0 %261 }
  0x8e   :  { %530 = vmatprep.mubr.msk.f32.mxu0 %vm263_vm5, %v260_v29 }
  0x8f   :  { %531 = vmatmul.mubr.msk.f32.vlgmr.msra.gmra.mrb[4].mxu0 %vm263_vm5, %v262_v31 }
  0x90   :  { %539 = vmatprep.mubr.msk.f32.mxu0 %vm343_vm6, %v30_v10 }
  0x91   :  { %v435_v54 = vpop.permute.xlu1 %434  ;;  %v430_v55 = vpop.permute.xlu0 %429 }
  0x95   :  { %v449_v61 = vpop.permute.xlu1 %448  ;;  %v444_v63 = vpop.permute.xlu0 %443 }
  0x99   :  { %v464_v10 = vpop.permute.xlu1 %463 }
 0x148   :  { %v145_v32 = vpop.f32.mrb[0].mxu1 }
 0x149   :  { %v514_v33 = vpop.f32.mrb[1].mxu1 }
 0x14c   :  { %v135_v34 = vpop.f32.mrb[0].mxu0  ;;  %v222_v35 = vpop.f32.mrb[2].mxu1 }
 0x14d   :  { %v223_v36 = vadd.f32 %v222_v35, %v135_v34  ;;  %v508_v37 = vpop.f32.mrb[1].mxu0  ;;  %v521_v38 = vpop.f32.mrb[3].mxu1 }
 0x14f   :  { %v251_v41 = vadd.f32 %v239_v23, %v223_v36 }
 0x150   :  { %v140_v39 = vpop.f32.mrb[2].mxu0  ;;  %v227_v40 = vpop.f32.mrb[4].mxu1 }
 0x151   :  { %v228_v42 = vadd.f32 %v227_v40, %v140_v39  ;;  %v511_v43 = vpop.f32.mrb[3].mxu0  ;;  %v524_v44 = vpop.f32.mrb[5].mxu1  ;;  %v254_v47 = vmax.f32 %v251_v41, 0.0 }
 0x153   :  { %v252_v45 = vadd.f32 %v244_v25, %v228_v42 }
 0x154   :  { %v232_v46 = vpop.f32.mrb[6].mxu1 }
 0x155   :  { %v255_v48 = vmax.f32 %v252_v45, 0.0  ;;  %v233_v49 = vadd.f32 %v232_v46, %v145_v32  ;;  %v527_v50 = vpop.f32.mrb[7].mxu1 }
 0x157   :  { %v253_v51 = vadd.f32 %v249_v24, %v233_v49  ;;  %v545_v52 = vpack.c.bf16 %v255_v48, %v254_v47 }
 0x159   :  { %v256_v53 = vmax.f32 %v253_v51, 0.0  ;;  %546 = vmatprep.subr.bf16.mxu0 %v545_v52 }
 0x15a   :  { %548 = vmatpush3.bf16.msra.mxu0 %v545_v52 }
 0x15b   :  { %537 = vmatprep.subr.msk.mxu0 %vm348_vm7, %v256_v53 }
 0x15e   :  { %538 = vmatpush3.msk.msra.mxu0 %vm348_vm7, %v256_v53 }
 0x15f   :  { %540 = vmatmul.mubr.msk.f32.vlgmr.msra.gmra.mrb[4].mxu0 %vm343_vm6, %v638_v11 }
 0x232   :  { %v541_v56 = vpop.f32.mrb[4].mxu0 }
 0x233   :  { %v438_v57 = vadd.f32 %v541_v56, %v435_v54  ;;  %v418_v58 = vpop.f32.mrb[5].mxu0 }
 0x234   :  { %v437_v59 = vadd.f32 %v430_v55, %v418_v58 }
 0x235   :  { %v440_v60 = vmax.f32 %v438_v57, 0.0 }
 0x236   :  { %v439_v62 = vmax.f32 %v437_v59, 0.0 }
 0x237   :  { %v452_v0 = vmul.f32 %v449_v61, %v440_v60 }
 0x238   :  { %v451_v1 = vmul.f32 %v444_v63, %v439_v62 }
 0x239   :  { %v453_v2 = vsel %vm65_vm0, %v452_v0, 0.0 }
 0x23a   :  { %v454_v3 = vadd.f32 %v453_v2, %v451_v1 }
 0x23c   :  { %v455_v4 = vrot.slane %v454_v3, 4 }
 0x23e   :  { %v456_v5 = vadd.f32 %v455_v4, %v454_v3 }
 0x240   :  { %v457_v6 = vrot.slane %v456_v5, 2 }
 0x242   :  { %v458_v7 = vadd.f32 %v457_v6, %v456_v5 }
 0x244   :  { %v459_v8 = vrot.slane %v458_v7, 1 }
 0x246   :  { %v460_v9 = vadd.f32 %v459_v8, %v458_v7 }
 0x248   :  { %v466_v11 = vadd.f32 %v464_v10, %v460_v9 }
 0x24a   :  { %467 = vst [vmem:[%s683_s6] sm:$0x1] %v466_v11 }

</bundles_post_ra>
